<compile_context>
chip_gen: v7x
topology: tpu7x:2x2x1
jax: 0.10.0
libtpu: 0.0.40
codegen_flags: <defaults>
</compile_context>

<pallas_src>
import jax
import jax.numpy as jnp
from jax.experimental import pallas as pl
from jax.experimental.pallas import tpu as pltpu


D_IN = 256
H1 = 128
H2 = 64          # logical hidden-2 width
H2_PAD = 128     # padded to full lane width for layers 2-3
N_OUT = 10       # logical output width
N_OUT_PAD = 16   # padded output lane width (masked vst, 8x less HBM than 128)


def _round_up(n, m):
    return ((n + m - 1) // m) * m


# --------------------------------------------------------------------------
# Kernel: one batch tile through all three layers, f32 accumulation on MXU.
# --------------------------------------------------------------------------
def _mlp_kernel(x_ref, w1_ref, b1_ref, w2_ref, b2_ref, w3_ref, b3_ref, o_ref):
    cdt = w1_ref.dtype  # compute dtype (f32 or bf16)

    # layer 1: (TB,256) @ (256,128) + (1,128), ReLU   (already full-lane)
    h1 = jnp.dot(x_ref[...], w1_ref[...], preferred_element_type=jnp.float32)
    h1 = jnp.maximum(h1 + b1_ref[...], 0.0).astype(cdt)

    # layer 2 (hidden padded 64->128): (TB,128) @ (128,128) + (1,128), ReLU
    # padded columns stay exactly zero (zero weights + zero bias -> ReLU(0)=0)
    h2 = jnp.dot(h1, w2_ref[...], preferred_element_type=jnp.float32)
    h2 = jnp.maximum(h2 + b2_ref[...], 0.0).astype(cdt)

    # layer 3 (lane-padded 10->16): (TB,128) @ (128,16) + (1,16)
    # padded lanes stay exactly zero (zero weight cols + zero bias)
    out = jnp.dot(h2, w3_ref[...], preferred_element_type=jnp.float32)
    o_ref[...] = (out + b3_ref[...]).astype(o_ref.dtype)


# --------------------------------------------------------------------------
# One-time parameter preparation (padding + dtype cast), hoisted out of the
# forward pass so it is not re-materialized as XLA ops on every call.
# --------------------------------------------------------------------------
def prepare_params(params, *, compute_dtype=jnp.float32):
    w1, b1, w2, b2, w3, b3 = params
    assert w1.shape == (D_IN, H1) and w2.shape == (H1, H2) and w3.shape == (H2, N_OUT)

    w1p = w1.astype(compute_dtype)
    b1p = b1.astype(jnp.float32)                                   # (1, 128)

    # hidden 64 -> 128 padding (zeros)
    w2p = jnp.zeros((H1, H2_PAD), compute_dtype).at[:, :H2].set(w2.astype(compute_dtype))
    b2p = jnp.zeros((1, H2_PAD), jnp.float32).at[:, :H2].set(b2.astype(jnp.float32))

    # output 10 -> 16 lane padding (zeros); rows 64..127 also zero
    w3p = jnp.zeros((H2_PAD, N_OUT_PAD), compute_dtype).at[:H2, :N_OUT].set(
        w3.astype(compute_dtype))
    b3p = jnp.zeros((1, N_OUT_PAD), jnp.float32).at[:, :N_OUT].set(b3.astype(jnp.float32))

    return (w1p, b1p, w2p, b2p, w3p, b3p)


# --------------------------------------------------------------------------
# Forward wrapper.
# --------------------------------------------------------------------------
def simplenet_forward(x, prepared, *, max_tile=4096, vmem_limit_bytes=None):
    """x: [B, 256] -> [B, 10] float32.

    `prepared` comes from prepare_params().  max_tile=4096 fits every
    generation's scoped-VMEM default; v5e/v6e users may pass max_tile=8192
    with vmem_limit_bytes=64<<20.
    """
    w1, b1, w2, b2, w3, b3 = prepared
    B, d_in = x.shape
    assert d_in == D_IN, d_in

    cdt = w1.dtype
    # batch alignment: 8 sublanes for f32, 16 for bf16 (sublane packing)
    align = 16 if cdt == jnp.bfloat16 else 8
    x = x.astype(cdt)

    max_tile = max(align, (max_tile // align) * align)
    b_al = _round_up(B, align)
    # Split the batch across >=2 tiles whenever possible so the "parallel"
    # grid axis can shard over v7x's 2 TensorCores; cap at max_tile.
    tb = min(max_tile, _round_up(pl.cdiv(b_al, 2), align))
    b_pad = _round_up(b_al, tb)
    if b_pad != B:
        x = jnp.pad(x, ((0, b_pad - B), (0, 0)))
    grid = (b_pad // tb,)

    # weights/biases: full-array blocks, same block index every grid step
    # -> VMEM-resident, no re-DMA across the batch loop.
    def resident(arr):
        return pl.BlockSpec(arr.shape, lambda i: (0,) * arr.ndim)

    itemsize = jnp.dtype(cdt).itemsize
    flops = 2 * b_pad * (D_IN * H1 + H1 * H2_PAD + H2_PAD * N_OUT_PAD)
    weight_bytes = sum(int(a.size) * a.dtype.itemsize for a in (w1, b1, w2, b2, w3, b3))
    bytes_accessed = b_pad * D_IN * itemsize + b_pad * N_OUT_PAD * 4 + weight_bytes

    out = pl.pallas_call(
        _mlp_kernel,
        out_shape=jax.ShapeDtypeStruct((b_pad, N_OUT_PAD), jnp.float32),
        grid=grid,
        in_specs=[
            pl.BlockSpec((tb, D_IN), lambda i: (i, 0)),   # x: tiled over batch
            resident(w1), resident(b1),
            resident(w2), resident(b2),
            resident(w3), resident(b3),
        ],
        out_specs=pl.BlockSpec((tb, N_OUT_PAD), lambda i: (i, 0)),
        compiler_params=pltpu.CompilerParams(
            dimension_semantics=("parallel",),
            vmem_limit_bytes=vmem_limit_bytes),
        cost_estimate=pl.CostEstimate(
            flops=flops, transcendentals=0, bytes_accessed=bytes_accessed),
    )(x, w1, b1, w2, b2, w3, b3)

    # slice padded rows / padded lanes back to the logical shape
    # (cheap now: padded output is only 16 lanes wide, not 128)
    return out[:B, :N_OUT]


# --------------------------------------------------------------------------
# Init + reference (for the self-test).
# --------------------------------------------------------------------------
def init_params(key):
    """Deterministic init mimicking torch.nn.Linear default
    (U[-1/sqrt(fan_in), +1/sqrt(fan_in)]).  Weights stored as [in, out]."""
    dims = [(D_IN, H1), (H1, H2), (H2, N_OUT)]
    params = []
    for (fan_in, fan_out) in dims:
        key, kw, kb = jax.random.split(key, 3)
        bound = 1.0 / jnp.sqrt(fan_in)
        w = jax.random.uniform(kw, (fan_in, fan_out), jnp.float32, -bound, bound)
        b = jax.random.uniform(kb, (1, fan_out), jnp.float32, -bound, bound)
        params.extend([w, b])
    return tuple(params)


def simplenet_ref(x, params):
    w1, b1, w2, b2, w3, b3 = params
    h1 = jnp.maximum(x @ w1 + b1, 0.0)
    h2 = jnp.maximum(h1 @ w2 + b2, 0.0)
    return h2 @ w3 + b3


if __name__ == "__main__":
    key = jax.random.PRNGKey(0)
    key, kx1, kx2 = jax.random.split(key, 3)
    params = init_params(key)
    prepared_f32 = prepare_params(params, compute_dtype=jnp.float32)

    # small demo batch (note: at B=8 this measures launch overhead, not the
    # kernel — benchmark at B >= 4096 for meaningful numbers)
    B = 8
    x = jax.random.normal(kx1, (B, D_IN), jnp.float32)
    out = jax.block_until_ready(simplenet_forward(x, prepared_f32))
    ref = simplenet_ref(x, params)
    assert out.shape == (B, N_OUT), out.shape
    assert jnp.allclose(out, ref, atol=1e-4, rtol=1e-4), \
        float(jnp.max(jnp.abs(out - ref)))

    # ragged batch (not a multiple of 8) — exercises padding + grid=2 path
    B2 = 20
    x2 = jax.random.normal(kx2, (B2, D_IN), jnp.float32)
    out2 = jax.block_until_ready(simplenet_forward(x2, prepared_f32))
    ref2 = simplenet_ref(x2, params)
    assert out2.shape == (B2, N_OUT), out2.shape
    assert jnp.allclose(out2, ref2, atol=1e-4, rtol=1e-4), \
        float(jnp.max(jnp.abs(out2 - ref2)))

    # bf16 input/weight path (f32 accumulation): halves the dominant HBM
    # stream; looser tolerance vs the f32 reference.
    prepared_bf16 = prepare_params(params, compute_dtype=jnp.bfloat16)
    out3 = jax.block_until_ready(simplenet_forward(x2, prepared_bf16))
    assert out3.shape == (B2, N_OUT), out3.shape
    assert jnp.allclose(out3, ref2, atol=1e-1, rtol=1e-1), \
        float(jnp.max(jnp.abs(out3 - ref2)))

    print("KERNEL_OK")
</pallas_src>

<mosaic_0001>
module attributes {stable_mosaic.version = 11 : i64} {
  func.func @_mlp_kernel(%arg0: i32, %arg1: memref<8x256xf32, #tpu.memory_space<vmem>>, %arg2: memref<256x128xf32, #tpu.memory_space<vmem>>, %arg3: memref<1x128xf32, #tpu.memory_space<vmem>>, %arg4: memref<128x128xf32, #tpu.memory_space<vmem>>, %arg5: memref<1x128xf32, #tpu.memory_space<vmem>>, %arg6: memref<128x16xf32, #tpu.memory_space<vmem>>, %arg7: memref<1x16xf32, #tpu.memory_space<vmem>>, %arg8: memref<8x16xf32, #tpu.memory_space<vmem>>) attributes {dimension_semantics = [#tpu.dimension_semantics<parallel>], iteration_bounds = array<i64: 1>, scalar_prefetch = 0 : i64, scratch_operands = 0 : i64, tpu.core_type = #tpu.core_type<tc>, window_params = [{transform_indices = @transform_0, window_bounds = array<i64: 8, 256>}, {pipeline_mode = #tpu.pipeline_mode<synchronous>, transform_indices = @transform_1, window_bounds = array<i64: 256, 128>}, {pipeline_mode = #tpu.pipeline_mode<synchronous>, transform_indices = @transform_2, window_bounds = array<i64: 1, 128>}, {pipeline_mode = #tpu.pipeline_mode<synchronous>, transform_indices = @transform_3, window_bounds = array<i64: 128, 128>}, {pipeline_mode = #tpu.pipeline_mode<synchronous>, transform_indices = @transform_4, window_bounds = array<i64: 1, 128>}, {pipeline_mode = #tpu.pipeline_mode<synchronous>, transform_indices = @transform_5, window_bounds = array<i64: 128, 16>}, {pipeline_mode = #tpu.pipeline_mode<synchronous>, transform_indices = @transform_6, window_bounds = array<i64: 1, 16>}, {transform_indices = @transform_7, window_bounds = array<i64: 8, 16>}]} {
    %c0 = arith.constant 0 : index
    %c0_0 = arith.constant 0 : index
    %0 = vector.load %arg1[%c0, %c0_0] : memref<8x256xf32, #tpu.memory_space<vmem>>, vector<8x256xf32>
    %c0_1 = arith.constant 0 : index
    %c0_2 = arith.constant 0 : index
    %1 = vector.load %arg2[%c0_1, %c0_2] : memref<256x128xf32, #tpu.memory_space<vmem>>, vector<256x128xf32>
    %cst = arith.constant dense<0.000000e+00> : vector<8x128xf32>
    %2 = tpu.matmul %0, %1, %cst {dimension_numbers = #tpu.dot_dimension_numbers<[1], [0], [0], [1], [0, 0, 1, 1], [], []>} : vector<8x256xf32>, vector<256x128xf32>, vector<8x128xf32> -> vector<8x128xf32>
    %c0_3 = arith.constant 0 : index
    %c0_4 = arith.constant 0 : index
    %3 = vector.load %arg3[%c0_3, %c0_4] : memref<1x128xf32, #tpu.memory_space<vmem>>, vector<1x128xf32>
    %4 = vector.broadcast %3 : vector<1x128xf32> to vector<8x128xf32>
    %5 = arith.addf %2, %4 : vector<8x128xf32>
    %cst_5 = arith.constant 0.000000e+00 : f32
    %6 = vector.broadcast %cst_5 : f32 to vector<8x128xf32>
    %7 = arith.maximumf %5, %6 : vector<8x128xf32>
    %c0_6 = arith.constant 0 : index
    %c0_7 = arith.constant 0 : index
    %8 = vector.load %arg4[%c0_6, %c0_7] : memref<128x128xf32, #tpu.memory_space<vmem>>, vector<128x128xf32>
    %cst_8 = arith.constant dense<0.000000e+00> : vector<8x128xf32>
    %9 = tpu.matmul %7, %8, %cst_8 {dimension_numbers = #tpu.dot_dimension_numbers<[1], [0], [0], [1], [0, 0, 1, 1], [], []>} : vector<8x128xf32>, vector<128x128xf32>, vector<8x128xf32> -> vector<8x128xf32>
    %c0_9 = arith.constant 0 : index
    %c0_10 = arith.constant 0 : index
    %10 = vector.load %arg5[%c0_9, %c0_10] : memref<1x128xf32, #tpu.memory_space<vmem>>, vector<1x128xf32>
    %11 = vector.broadcast %10 : vector<1x128xf32> to vector<8x128xf32>
    %12 = arith.addf %9, %11 : vector<8x128xf32>
    %cst_11 = arith.constant 0.000000e+00 : f32
    %13 = vector.broadcast %cst_11 : f32 to vector<8x128xf32>
    %14 = arith.maximumf %12, %13 : vector<8x128xf32>
    %c0_12 = arith.constant 0 : index
    %c0_13 = arith.constant 0 : index
    %15 = vector.load %arg6[%c0_12, %c0_13] : memref<128x16xf32, #tpu.memory_space<vmem>>, vector<128x16xf32>
    %cst_14 = arith.constant dense<0.000000e+00> : vector<8x16xf32>
    %16 = tpu.matmul %14, %15, %cst_14 {dimension_numbers = #tpu.dot_dimension_numbers<[1], [0], [0], [1], [0, 0, 1, 1], [], []>} : vector<8x128xf32>, vector<128x16xf32>, vector<8x16xf32> -> vector<8x16xf32>
    %c0_15 = arith.constant 0 : index
    %c0_16 = arith.constant 0 : index
    %17 = vector.load %arg7[%c0_15, %c0_16] : memref<1x16xf32, #tpu.memory_space<vmem>>, vector<1x16xf32>
    %18 = vector.broadcast %17 : vector<1x16xf32> to vector<8x16xf32>
    %19 = arith.addf %16, %18 : vector<8x16xf32>
    %c0_17 = arith.constant 0 : index
    %c0_18 = arith.constant 0 : index
    %20 = vector.load %arg8[%c0_17, %c0_18] : memref<8x16xf32, #tpu.memory_space<vmem>>, vector<8x16xf32>
    tpu.vector_store %arg8[%c0_17, %c0_18], %19 {strides = array<i32>} : memref<8x16xf32, #tpu.memory_space<vmem>>, vector<8x16xf32>,
    return
  }
  func.func @transform_0(%arg0: i32) -> (i32, i32) {
    %c0_i32 = arith.constant 0 : i32
    %c0_i32_0 = arith.constant 0 : i32
    return %arg0, %c0_i32 : i32, i32
  }
  func.func @transform_1(%arg0: i32) -> (i32, i32) {
    %c0_i32 = arith.constant 0 : i32
    %c0_i32_0 = arith.constant 0 : i32
    %c0_i32_1 = arith.constant 0 : i32
    return %c0_i32, %c0_i32_0 : i32, i32
  }
  func.func @transform_2(%arg0: i32) -> (i32, i32) {
    %c0_i32 = arith.constant 0 : i32
    %c0_i32_0 = arith.constant 0 : i32
    %c0_i32_1 = arith.constant 0 : i32
    return %c0_i32, %c0_i32_0 : i32, i32
  }
  func.func @transform_3(%arg0: i32) -> (i32, i32) {
    %c0_i32 = arith.constant 0 : i32
    %c0_i32_0 = arith.constant 0 : i32
    %c0_i32_1 = arith.constant 0 : i32
    return %c0_i32, %c0_i32_0 : i32, i32
  }
  func.func @transform_4(%arg0: i32) -> (i32, i32) {
    %c0_i32 = arith.constant 0 : i32
    %c0_i32_0 = arith.constant 0 : i32
    %c0_i32_1 = arith.constant 0 : i32
    return %c0_i32, %c0_i32_0 : i32, i32
  }
  func.func @transform_5(%arg0: i32) -> (i32, i32) {
    %c0_i32 = arith.constant 0 : i32
    %c0_i32_0 = arith.constant 0 : i32
    %c0_i32_1 = arith.constant 0 : i32
    return %c0_i32, %c0_i32_0 : i32, i32
  }
  func.func @transform_6(%arg0: i32) -> (i32, i32) {
    %c0_i32 = arith.constant 0 : i32
    %c0_i32_0 = arith.constant 0 : i32
    %c0_i32_1 = arith.constant 0 : i32
    return %c0_i32, %c0_i32_0 : i32, i32
  }
  func.func @transform_7(%arg0: i32) -> (i32, i32) {
    %c0_i32 = arith.constant 0 : i32
    %c0_i32_0 = arith.constant 0 : i32
    return %arg0, %c0_i32 : i32, i32
  }
}

</mosaic_0001>

<bundles_post_ra>
// kernel: tpu_custom_call.1
= control target key start
LH: loop header
LB: loop body
LE: loop exit
PB: predicated region body
PF: predicated region fallthrough
CT: control target
= control target key end

     0   :  { %12 = vsyncpa [#allocation3], 0  ;;  %s832_s0 = inlined_call_operand.vmem [shape: f32[8,256], index: 0, kind: input, shape index: {}]   ;;  %s833_s1 = inlined_call_operand.hbm [shape: f32[256,128], index: 1, kind: input, shape index: {}]   ;;  %s834_s2 = inlined_call_operand.vmem [shape: f32[1,128], index: 2, kind: input, shape index: {}]   ;;  %s835_s3 = inlined_call_operand.vmem [shape: f32[128,128], index: 3, kind: input, shape index: {}]   ;;  %s836_s4 = inlined_call_operand.vmem [shape: f32[1,128], index: 4, kind: input, shape index: {}]   ;;  %s837_s5 = inlined_call_operand.vmem [shape: f32[128,16], index: 5, kind: input, shape index: {}]   ;;  %s838_s6 = inlined_call_operand.vmem [shape: f32[1,16], index: 6, kind: input, shape index: {}]   ;;  %s839_s7 = inlined_call_operand.hbm [shape: f32[8,16], index: 7, kind: output, shape index: {}]  }
   0x1   :  { %13 = vsyncpa [#allocation4], 0  ;;  %s634_s24 = smov [#allocation2]   ;;  %s586_s28 = scalar_lea.hbm %s833_s1, 4096 }
   0x2   :  { %s21_s25 = sshll.u32 %s634_s24, 4  ;;  %p587_p0 = scmp.ne.s32.totalorder %s833_s1, %s586_s28  ;;  %s22_s25 = int_to_ptr.vmem [resolvable:$true] %s21_s25 }
   0x3   :  { %p590_p1 = scmp.lt.u32.totalorder %s586_s28, %s833_s1 }
   0x5   :  { %p592_p2 = pnand %p590_p1, %p587_p0 }
   0x7   :  { %595 = shalt.err (!%p592_p2)
}
   0x8   :  { %s596_s10 = scalar_lea.vmem %s22_s25, 4096  ;;  %p601_p4 = scmp.lt.s32.totalorder %s22_s25, %s22_s25 }
   0x9   :  { %p597_p3 = scmp.ne.s32.totalorder %s22_s25, %s596_s10  ;;  %p602_p5 = scmp.lt.s32.totalorder %s596_s10, %s596_s10 }
   0xb   :  { %p603_p6 = por %p602_p5, %p601_p4 }
   0xd   :  { %p604_p7 = pnand %p603_p6, %p597_p3 }
   0xf   :  { %607 = shalt.err (!%p604_p7)
}
  0x10   :  { %s635_s11 = smov 128   ;;  %s636_s12 = smov 8  }
  0x11   :  { %27 = dma.hbm_to_vmem [thread:$0]  %s833_s1, 4096, %s22_s25, [#allocation3], %s635_s11, %s635_s11, %s636_s12  }
  0x12   :  { %630 = dma.done.wait [#allocation3], 4096  }
  0x13   :  { %631 = vsyncadd [#allocation3], 4294963200  ;;  %v637_v0 = vmov 0.0|0.0   ;;  %v59_v1 = vld [vmem:[#allocation2 + $0x80] sm:$0xff]  ;;  %v60_v2 = vld [vmem:[#allocation2 + $0x88] sm:$0xff]  ;;  %vm638_vm0 = vmmov 0  }
  0x14   :  { %531 = vmatprep.subr.bf16.mxu1 %v637_v0  ;;  %v43_v3 = vld [vmem:[#allocation2] sm:$0xff]  ;;  %v499_v4 = vpack.c.bf16 %v60_v2, %v59_v1  ;;  %v44_v5 = vld [vmem:[#allocation2 + $0x8] sm:$0xff]  ;;  %v61_v6 = vld [vmem:[#allocation2 + $0x90] sm:$0xff]  ;;  %s640_s12 = smov [#allocation5]   ;;  %vm340_vm1 = vcmask 130048  }
  0x15   :  { %v62_v7 = vld [vmem:[#allocation2 + $0x98] sm:$0xff]  ;;  %v501_v8 = vpack.c.bf16 %v44_v5, %v43_v3  ;;  %v45_v10 = vld [vmem:[#allocation2 + $0x10] sm:$0xff]  ;;  %v63_v12 = vld [vmem:[#allocation2 + $0xa0] sm:$0xff]  ;;  %s348_s13 = sshll.u32 %s640_s12, 4  ;;  %s349_s13 = int_to_ptr.vmem [resolvable:$true] %s348_s13 }
  0x16   :  { %v503_v9 = vpack.c.bf16 %v62_v7, %v61_v6  ;;  %v46_v11 = vld [vmem:[#allocation2 + $0x18] sm:$0xff]  ;;  %500 = vmatprep.subr.bf16.mxu0 %v499_v4  ;;  %v64_v13 = vld [vmem:[#allocation2 + $0xa8] sm:$0xff]  ;;  %v47_v16 = vld [vmem:[#allocation2 + $0x20] sm:$0xff]  ;;  %p613_p9 = scmp.lt.s32.totalorder %s349_s13, %s349_s13 }
  0x17   :  { %502 = vmatpush3.bf16.msra.mxu0 %v501_v8  ;;  %v505_v14 = vpack.c.bf16 %v46_v11, %v45_v10  ;;  %v507_v15 = vpack.c.bf16 %v64_v13, %v63_v12  ;;  %v48_v17 = vld [vmem:[#allocation2 + $0x28] sm:$0xff]  ;;  %v65_v18 = vld [vmem:[#allocation2 + $0xb0] sm:$0xff]  ;;  %v66_v19 = vld [vmem:[#allocation2 + $0xb8] sm:$0xff]  ;;  %v639_v12 = vmov 0.0  }
  0x18   :  { %504 = vmatprep.subr.bf16.mxu0 %v503_v9  ;;  %v509_v20 = vpack.c.bf16 %v48_v17, %v47_v16  ;;  %v511_v21 = vpack.c.bf16 %v66_v19, %v65_v18  ;;  %v49_v22 = vld [vmem:[#allocation2 + $0x30] sm:$0xff]  ;;  %v50_v23 = vld [vmem:[#allocation2 + $0x38] sm:$0xff]  ;;  %v67_v24 = vld [vmem:[#allocation2 + $0xc0] sm:$0xff]  ;;  %461 = vmatprep.mubr.msk.f32.mxu1 %vm638_vm0, %v639_v12 }
  0x19   :  { %v68_v25 = vld [vmem:[#allocation2 + $0xc8] sm:$0xff]  ;;  %v153_v27 = vld [vmem:[%s835_s3] sm:$0xff]  ;;  %v513_v29 = vpack.c.bf16 %v50_v23, %v49_v22  ;;  %v155_v31 = vld [vmem:[%s835_s3 + $0x10] sm:$0xff] }
  0x1a   :  { %v42_v26 = vld [vmem:[%s832_s0 + $0x8] sm:$0xff]  ;;  %v156_v32 = vld [vmem:[%s835_s3 + $0x18] sm:$0xff]  ;;  %v515_v33 = vpack.c.bf16 %v68_v25, %v67_v24  ;;  %v51_v34 = vld [vmem:[#allocation2 + $0x40] sm:$0xff] }
  0x1b   :  { %506 = vmatpush3.bf16.msra.mxu0 %v505_v14  ;;  %146 = vmatprep.mubr.f32.mxu0 %v42_v26  ;;  %v154_v28 = vld [vmem:[%s835_s3 + $0x8] sm:$0xff]  ;;  %v69_v36 = vld [vmem:[#allocation2 + $0xd0] sm:$0xff]  ;;  %v70_v37 = vld [vmem:[#allocation2 + $0xd8] sm:$0xff]  ;;  %v535_v38 = vpack.c.bf16 %v156_v32, %v155_v31 }
  0x1c   :  { %508 = vmatprep.subr.bf16.mxu0 %v507_v15  ;;  %v532_v30 = vpack.c.bf16 %v154_v28, %v153_v27  ;;  %v52_v35 = vld [vmem:[#allocation2 + $0x48] sm:$0xff]  ;;  %v157_v39 = vld [vmem:[%s835_s3 + $0x20] sm:$0xff]  ;;  %v519_v42 = vpack.c.bf16 %v70_v37, %v69_v36  ;;  %v53_v43 = vld [vmem:[#allocation2 + $0x50] sm:$0xff] }
  0x1d   :  { %v158_v40 = vld [vmem:[%s835_s3 + $0x28] sm:$0xff]  ;;  %v517_v41 = vpack.c.bf16 %v52_v35, %v51_v34  ;;  %v54_v44 = vld [vmem:[#allocation2 + $0x58] sm:$0xff]  ;;  %v71_v45 = vld [vmem:[#allocation2 + $0xe0] sm:$0xff] }
  0x1e   :  { %533 = vmatpush3.bf16.msra.mxu1 %v532_v30  ;;  %v72_v46 = vld [vmem:[#allocation2 + $0xe8] sm:$0xff]  ;;  %v538_v47 = vpack.c.bf16 %v158_v40, %v157_v39  ;;  %v159_v48 = vld [vmem:[%s835_s3 + $0x30] sm:$0xff]  ;;  %v160_v49 = vld [vmem:[%s835_s3 + $0x38] sm:$0xff]  ;;  %v521_v50 = vpack.c.bf16 %v54_v44, %v53_v43 }
  0x1f   :  { %510 = vmatpush3.bf16.msra.mxu0 %v509_v20  ;;  %534 = vmatprep.subr.bf16.mxu1 %v637_v0  ;;  %v523_v51 = vpack.c.bf16 %v72_v46, %v71_v45  ;;  %v55_v52 = vld [vmem:[#allocation2 + $0x60] sm:$0xff]  ;;  %v56_v53 = vld [vmem:[#allocation2 + $0x68] sm:$0xff]  ;;  %v73_v54 = vld [vmem:[#allocation2 + $0xf0] sm:$0xff]  ;;  %v541_v56 = vpack.c.bf16 %v160_v49, %v159_v48 }
  0x20   :  { %512 = vmatprep.subr.bf16.mxu0 %v511_v21  ;;  %v74_v55 = vld [vmem:[#allocation2 + $0xf8] sm:$0xff]  ;;  %v161_v57 = vld [vmem:[%s835_s3 + $0x40] sm:$0xff]  ;;  %v162_v58 = vld [vmem:[%s835_s3 + $0x48] sm:$0xff]  ;;  %v525_v59 = vpack.c.bf16 %v56_v53, %v55_v52 }
  0x21   :  { %v527_v60 = vpack.c.bf16 %v74_v55, %v73_v54  ;;  %v57_v61 = vld [vmem:[#allocation2 + $0x70] sm:$0xff]  ;;  %v58_v62 = vld [vmem:[#allocation2 + $0x78] sm:$0xff]  ;;  %v544_v63 = vpack.c.bf16 %v162_v58, %v161_v57  ;;  %v41_v5 = vld [vmem:[%s832_s0] sm:$0xff] }
  0x22   :  { %536 = vmatpush3.bf16.msra.mxu1 %v535_v38  ;;  %v163_v1 = vld [vmem:[%s835_s3 + $0x50] sm:$0xff]  ;;  %v164_v2 = vld [vmem:[%s835_s3 + $0x58] sm:$0xff]  ;;  %v529_v3 = vpack.c.bf16 %v58_v62, %v57_v61  ;;  %v165_v6 = vld [vmem:[%s835_s3 + $0x60] sm:$0xff] }
  0x23   :  { %514 = vmatpush3.bf16.msra.mxu0 %v513_v29  ;;  %537 = vmatprep.subr.bf16.mxu1 %v637_v0  ;;  %v547_v4 = vpack.c.bf16 %v164_v2, %v163_v1  ;;  %v166_v7 = vld [vmem:[%s835_s3 + $0x68] sm:$0xff]  ;;  %v167_v9 = vld [vmem:[%s835_s3 + $0x70] sm:$0xff]  ;;  %v168_v10 = vld [vmem:[%s835_s3 + $0x78] sm:$0xff] }
  0x24   :  { %516 = vmatprep.subr.bf16.mxu0 %v515_v33  ;;  %v550_v8 = vpack.c.bf16 %v166_v7, %v165_v6  ;;  %v553_v11 = vpack.c.bf16 %v168_v10, %v167_v9  ;;  %v247_v13 = vld [vmem:[%s837_s5] sm:$0xff]  ;;  %v248_v14 = vld [vmem:[%s837_s5 + $0x8] sm:$0xff]  ;;  %v249_v15 = vld [vmem:[%s837_s5 + $0x10] sm:$0xff] }
  0x25   :  { %v556_v16 = vpack.c.bf16 %v248_v14, %v247_v13  ;;  %v250_v17 = vld [vmem:[%s837_s5 + $0x18] sm:$0xff]  ;;  %v251_v19 = vld [vmem:[%s837_s5 + $0x20] sm:$0xff]  ;;  %v252_v20 = vld [vmem:[%s837_s5 + $0x28] sm:$0xff] }
  0x26   :  { %539 = vmatpush3.bf16.msra.mxu1 %v538_v47  ;;  %v559_v18 = vpack.c.bf16 %v250_v17, %v249_v15  ;;  %v562_v21 = vpack.c.bf16 %v252_v20, %v251_v19  ;;  %v253_v22 = vld [vmem:[%s837_s5 + $0x30] sm:$0xff]  ;;  %v254_v23 = vld [vmem:[%s837_s5 + $0x38] sm:$0xff]  ;;  %v255_v25 = vld [vmem:[%s837_s5 + $0x40] sm:$0xff] }
  0x27   :  { %518 = vmatpush3.bf16.msra.mxu0 %v517_v41  ;;  %540 = vmatprep.subr.bf16.mxu1 %v637_v0  ;;  %v565_v24 = vpack.c.bf16 %v254_v23, %v253_v22  ;;  %v256_v26 = vld [vmem:[%s837_s5 + $0x48] sm:$0xff]  ;;  %v257_v28 = vld [vmem:[%s837_s5 + $0x50] sm:$0xff]  ;;  %v258_v29 = vld [vmem:[%s837_s5 + $0x58] sm:$0xff] }
  0x28   :  { %520 = vmatprep.subr.bf16.mxu0 %v519_v42  ;;  %v568_v27 = vpack.c.bf16 %v256_v26, %v255_v25  ;;  %v571_v30 = vpack.c.bf16 %v258_v29, %v257_v28  ;;  %v259_v31 = vld [vmem:[%s837_s5 + $0x60] sm:$0xff]  ;;  %v260_v32 = vld [vmem:[%s837_s5 + $0x68] sm:$0xff]  ;;  %v261_v40 = vld [vmem:[%s837_s5 + $0x70] sm:$0xff] }
  0x29   :  { %v574_v33 = vpack.c.bf16 %v260_v32, %v259_v31  ;;  %v357_v35 = vld [vmem:[%s834_s2] ss:$0 sm:$0xff]  ;;  %v262_v41 = vld [vmem:[%s837_s5 + $0x78] sm:$0xff]  ;;  %s608_s5 = scalar_lea.vmem %s349_s13, 128 }
  0x2a   :  { %542 = vmatpush3.bf16.msra.mxu1 %v541_v56  ;;  %v577_v42 = vpack.c.bf16 %v262_v41, %v261_v40  ;;  %v359_v47 = vld [vmem:[%s838_s6] ss:$0 sm:$0xff]  ;;  %p609_p8 = scmp.ne.s32.totalorder %s349_s13, %s608_s5  ;;  %p614_p10 = scmp.lt.s32.totalorder %s608_s5, %s608_s5 }
  0x2b   :  { %522 = vmatpush3.bf16.msra.mxu0 %v521_v50  ;;  %543 = vmatprep.subr.bf16.mxu1 %v637_v0 }
  0x2c   :  { %524 = vmatprep.subr.bf16.mxu0 %v523_v51  ;;  %p615_p11 = por %p614_p10, %p613_p9 }
  0x2e   :  { %545 = vmatpush3.bf16.msra.mxu1 %v544_v63  ;;  %p616_p12 = pnand %p615_p11, %p609_p8 }
  0x2f   :  { %526 = vmatpush3.bf16.msra.mxu0 %v525_v59  ;;  %546 = vmatprep.subr.bf16.mxu1 %v637_v0 }
  0x30   :  { %528 = vmatprep.subr.bf16.mxu0 %v527_v60 }
  0x32   :  { %548 = vmatpush3.bf16.msra.mxu1 %v547_v4 }
  0x33   :  { %530 = vmatpush3.bf16.msra.mxu0 %v529_v3  ;;  %549 = vmatprep.subr.bf16.mxu1 %v637_v0 }
  0x34   :  { %555 = vmatprep.subr.bf16.mxu0 %v637_v0 }
  0x36   :  { %147 = vmatmul.mubr.f32.vlgmr.msra.gmra.mrb[0].mxu0 %v41_v5  ;;  %551 = vmatpush3.bf16.msra.mxu1 %v550_v8 }
  0x37   :  { %552 = vmatprep.subr.bf16.mxu1 %v637_v0  ;;  %496 = vmatprep.mubr.msk.f32.mxu0 %vm638_vm0, %v639_v12 }
  0x38   :  { %557 = vmatpush3.bf16.msra.mxu0 %v556_v16 }
  0x39   :  { %558 = vmatprep.subr.bf16.mxu0 %v637_v0 }
  0x3a   :  { %554 = vmatpush3.bf16.msra.mxu1 %v553_v11 }
  0x3c   :  { %560 = vmatpush3.bf16.msra.mxu0 %v559_v18 }
  0x3d   :  { %561 = vmatprep.subr.bf16.mxu0 %v637_v0 }
  0x40   :  { %563 = vmatpush3.bf16.msra.mxu0 %v562_v21 }
  0x41   :  { %564 = vmatprep.subr.bf16.mxu0 %v637_v0 }
  0x44   :  { %566 = vmatpush3.bf16.msra.mxu0 %v565_v24 }
  0x45   :  { %567 = vmatprep.subr.bf16.mxu0 %v637_v0 }
  0x48   :  { %569 = vmatpush3.bf16.msra.mxu0 %v568_v27 }
  0x49   :  { %570 = vmatprep.subr.bf16.mxu0 %v637_v0 }
  0x4c   :  { %572 = vmatpush3.bf16.msra.mxu0 %v571_v30 }
  0x4d   :  { %573 = vmatprep.subr.bf16.mxu0 %v637_v0 }
  0x50   :  { %575 = vmatpush3.bf16.msra.mxu0 %v574_v33 }
  0x51   :  { %576 = vmatprep.subr.bf16.mxu0 %v637_v0  ;;  %v358_v0 = vld [vmem:[%s836_s4] ss:$0 sm:$0xff] }
  0x54   :  { %578 = vmatpush3.bf16.msra.mxu0 %v577_v42 }
 0x109   :  { %v392_v34 = vpop.f32.mrb[0].mxu0 }
 0x10a   :  { %v393_v36 = vpop.f32.mrb[1].mxu0 }
 0x10b   :  { %v394_v37 = vadd.f32 %v393_v36, %v392_v34 }
 0x10d   :  { %v149_v38 = vadd.f32 %v394_v37, %v357_v35 }
 0x10f   :  { %v152_v39 = vmax.f32 %v149_v38, 0.0 }
 0x111   :  { %462 = vmatmul.mubr.f32.vlgmr.msra.gmra.mrb[0].mxu1 %v152_v39 }
 0x1e4   :  { %v242_v43 = vpop.f32.mrb[0].mxu1 }
 0x1e5   :  { %v243_v44 = vadd.f32 %v358_v0, %v242_v43  ;;  %v463_v45 = vpop.f32.mrb[1].mxu1 }
 0x1e7   :  { %v246_v46 = vmax.f32 %v243_v44, 0.0 }
 0x1e9   :  { %497 = vmatmul.mubr.f32.vlgmr.msra.gmra.mrb[2].mxu0 %v246_v46 }
 0x2bc   :  { %v336_v48 = vpop.f32.mrb[2].mxu0 }
 0x2bd   :  { %v337_v49 = vadd.f32 %v359_v47, %v336_v48  ;;  %v498_v50 = vpop.f32.mrb[3].mxu0 }
 0x2bf   :  { %341 = vst.msk [vmem:[#allocation5] sm:$0xff] %vm340_vm1, %v337_v49 }
 0x2c0   :  { %619 = shalt.err (!%p616_p12)
}
 0x2c1   :  { %s620_s1 = scalar_lea.hbm %s839_s7, 128 }
 0x2c2   :  { %p621_p13 = scmp.ne.s32.totalorder %s839_s7, %s620_s1  ;;  %p624_p0 = scmp.lt.u32.totalorder %s620_s1, %s839_s7 }
 0x2c4   :  { %p626_p1 = pnand %p624_p0, %p621_p13 }
 0x2c6   :  { %629 = shalt.err (!%p626_p1)
}
 0x2c7   :  { %351 = dma.vmem_to_hbm [thread:$0]  %s349_s13, 128, %s839_s7, [#allocation4]  }
 0x2c8   :  { %632 = dma.done.wait [#allocation4], 128  }
 0x2c9   :  { %633 = vsyncadd [#allocation4], 4294967168 }
 0x2ca   :  { %355 = vsyncpa [#allocation3], 1 }
 0x2cb   :  { %356 = vsyncpa [#allocation4], 1 }

</bundles_post_ra>
